<compile_context>
chip_gen: v7x
topology: tpu7x:2x2x1
jax: 0.10.0
libtpu: 0.0.40
codegen_flags: <defaults>
</compile_context>

<pallas_src>
import functools

import jax
import jax.numpy as jnp
import numpy as np
from jax import lax
from jax.experimental import pallas as pl
from jax.experimental.pallas import tpu as pltpu

LANE = 128      # TPU lane width: every matmul K / N dimension is zero-padded to this.
SUBLANE = 8     # edge-batch segments are padded to multiples of this.


# ----------------------------------------------------------------------------
# Fused Pallas kernel: SAGE layer 1 -> SAGE layer 2 -> gather -> predictor MLP
# ----------------------------------------------------------------------------
def _fused_gnn_kernel(ids_ref, feat_ref, adj_ref,
                      wn1_ref, ws1_ref, b1_ref,
                      wn2_ref, ws2_ref, b2_ref,
                      wp1_ref, bp1_ref, wp2_ref, bp2_ref, wp3_ref, bp3_ref,
                      o_ref, *, e_pad):
    x = feat_ref[...]            # (N, LANE)  bf16, zero-padded node features
    a = adj_ref[...]             # (N, N)     bf16, row-normalized adjacency (mean agg)

    # ---- SAGE layer 1: dot(A@x, Wn) + dot(x, Ws) + b ; ReLU ------------------
    # (two K=128 dots summed in the f32 accumulator: no lane-concat copy)
    agg1 = jnp.dot(a, x, preferred_element_type=jnp.float32).astype(jnp.bfloat16)
    h1 = (jnp.dot(agg1, wn1_ref[...], preferred_element_type=jnp.float32)
          + jnp.dot(x, ws1_ref[...], preferred_element_type=jnp.float32)
          + b1_ref[...])
    h1 = jnp.maximum(h1, 0.0).astype(jnp.bfloat16)              # (N, LANE)

    # ---- SAGE layer 2 (final layer -> no ReLU) -------------------------------
    agg2 = jnp.dot(a, h1, preferred_element_type=jnp.float32).astype(jnp.bfloat16)
    h2 = (jnp.dot(agg2, wn2_ref[...], preferred_element_type=jnp.float32)
          + jnp.dot(h1, ws2_ref[...], preferred_element_type=jnp.float32)
          + b2_ref[...])                                         # (N, LANE) f32
    h2 = h2.astype(jnp.bfloat16)  # rounded here anyway before the predictor dots

    # ---- in-kernel gather of src / pos_dst / neg_dst rows (bf16 one-hot dot) -
    ids = ids_ref[...]                                           # (3*e_pad, 1) int32
    n = x.shape[0]
    cols = lax.broadcasted_iota(jnp.int32, (ids.shape[0], n), 1)
    sel = jnp.where(cols == ids, 1.0, 0.0).astype(jnp.bfloat16)  # exact in bf16
    g = jnp.dot(sel, h2, preferred_element_type=jnp.float32)     # (3*e_pad, LANE) f32

    h_src = g[0:e_pad]                                           # 8-sublane aligned
    h_pos = g[e_pad:2 * e_pad]
    h_neg = g[2 * e_pad:3 * e_pad]

    # ---- predictor MLP on [src*pos ; src*neg]  (no duplicated src rows) ------
    z = jnp.concatenate([h_src * h_pos, h_src * h_neg], axis=0)  # (2*e_pad, LANE) f32
    z = jnp.dot(z.astype(jnp.bfloat16), wp1_ref[...],
                preferred_element_type=jnp.float32) + bp1_ref[...]
    z = jnp.maximum(z, 0.0)
    z = jnp.dot(z.astype(jnp.bfloat16), wp2_ref[...],
                preferred_element_type=jnp.float32) + bp2_ref[...]
    z = jnp.maximum(z, 0.0)
    z = jnp.dot(z.astype(jnp.bfloat16), wp3_ref[...],
                preferred_element_type=jnp.float32) + bp3_ref[...]
    o_ref[...] = z                                               # (2*e_pad, 128) f32


# ----------------------------------------------------------------------------
# Jitted wrapper: pad inputs, one pallas_call, slice real score column
# ----------------------------------------------------------------------------
@jax.jit
def _forward(params, node_feat, src_ids, pos_dst_ids, neg_dst_ids):
    id_count = src_ids.shape[0]
    e_pad = ((id_count + SUBLANE - 1) // SUBLANE) * SUBLANE      # sublane-align E
    num_nodes = params["adj"].shape[0]

    def pad_ids(v):
        out = jnp.zeros((e_pad,), jnp.int32)
        return out.at[:id_count].set(v.astype(jnp.int32))

    ids = jnp.concatenate([pad_ids(src_ids), pad_ids(pos_dst_ids),
                           pad_ids(neg_dst_ids)]).reshape(-1, 1)  # (3*e_pad, 1)

    feat = jnp.zeros((num_nodes, LANE), jnp.bfloat16)
    feat = feat.at[:, :node_feat.shape[1]].set(node_feat.astype(jnp.bfloat16))

    # Honest cost hint for the XLA scheduler (working set is well under 1 MiB).
    flops = (2 * 2 * num_nodes * num_nodes * LANE            # the two A@x aggs
             + 4 * 2 * num_nodes * LANE * LANE               # 2 layers x (Wn,Ws)
             + 2 * (3 * e_pad) * num_nodes * LANE            # one-hot gather
             + 3 * 2 * (2 * e_pad) * LANE * LANE)            # predictor MLP
    bytes_accessed = (ids.size * 4 + feat.size * 2 + num_nodes * num_nodes * 2
                      + 7 * LANE * LANE * 2 + 5 * LANE * 4
                      + 2 * e_pad * LANE * 4)

    vmem = pl.BlockSpec(memory_space=pltpu.MemorySpace.VMEM)
    out = pl.pallas_call(
        functools.partial(_fused_gnn_kernel, e_pad=e_pad),
        out_shape=jax.ShapeDtypeStruct((2 * e_pad, LANE), jnp.float32),
        in_specs=[vmem] * 15,
        out_specs=vmem,
        cost_estimate=pl.CostEstimate(flops=flops, transcendentals=0,
                                      bytes_accessed=bytes_accessed),
    )(ids, feat, params["adj"],
      params["wn1"], params["ws1"], params["b1"],
      params["wn2"], params["ws2"], params["b2"],
      params["wp1"], params["bp1"], params["wp2"], params["bp2"],
      params["wp3"], params["bp3"])

    pos_scores = out[:id_count, :1]                   # real output is column 0
    neg_scores = out[e_pad:e_pad + id_count, :1]
    return pos_scores, neg_scores


# ----------------------------------------------------------------------------
# Pure-JAX reference (mirrors the kernel's bf16/f32 mixed precision)
# ----------------------------------------------------------------------------
def _reference_forward(params, node_feat, src_ids, pos_dst_ids, neg_dst_ids):
    num_nodes = params["adj"].shape[0]
    feat = jnp.zeros((num_nodes, LANE), jnp.bfloat16)
    feat = feat.at[:, :node_feat.shape[1]].set(node_feat.astype(jnp.bfloat16))
    a = params["adj"]

    agg1 = jnp.dot(a, feat, preferred_element_type=jnp.float32).astype(jnp.bfloat16)
    h1 = (jnp.dot(agg1, params["wn1"], preferred_element_type=jnp.float32)
          + jnp.dot(feat, params["ws1"], preferred_element_type=jnp.float32)
          + params["b1"])
    h1 = jnp.maximum(h1, 0.0).astype(jnp.bfloat16)

    agg2 = jnp.dot(a, h1, preferred_element_type=jnp.float32).astype(jnp.bfloat16)
    h2 = (jnp.dot(agg2, params["wn2"], preferred_element_type=jnp.float32)
          + jnp.dot(h1, params["ws2"], preferred_element_type=jnp.float32)
          + params["b2"]).astype(jnp.bfloat16)

    h_src = h2[src_ids].astype(jnp.float32)
    h_pos = h2[pos_dst_ids].astype(jnp.float32)
    h_neg = h2[neg_dst_ids].astype(jnp.float32)

    def mlp(z):
        z = jnp.dot(z.astype(jnp.bfloat16), params["wp1"],
                    preferred_element_type=jnp.float32) + params["bp1"]
        z = jnp.maximum(z, 0.0)
        z = jnp.dot(z.astype(jnp.bfloat16), params["wp2"],
                    preferred_element_type=jnp.float32) + params["bp2"]
        z = jnp.maximum(z, 0.0)
        z = jnp.dot(z.astype(jnp.bfloat16), params["wp3"],
                    preferred_element_type=jnp.float32) + params["bp3"]
        return z[:, :1]

    return mlp(h_src * h_pos), mlp(h_src * h_neg)


# ----------------------------------------------------------------------------
# Model: parameter setup / pre-packing (all padding hoisted to __init__)
# ----------------------------------------------------------------------------
class EdgePredictionGNNModelJAX:
    def __init__(self, num_nodes, in_feat_dim, hidden_feat_dim, num_layer, key):
        assert num_layer == 2, "fused kernel implements the spec's num_layer=2"
        self.num_nodes = num_nodes
        h = hidden_feat_dim

        keys = jax.random.split(key, 2 * num_layer + 3)

        def lin(k, fin, fout):
            return jax.random.normal(k, (fin, fout), jnp.float32) / jnp.sqrt(
                jnp.float32(fin))

        wn1 = lin(keys[0], in_feat_dim, h)   # layer-1 neighbor weight
        ws1 = lin(keys[1], in_feat_dim, h)   # layer-1 self weight
        wn2 = lin(keys[2], h, h)             # layer-2 neighbor weight
        ws2 = lin(keys[3], h, h)             # layer-2 self weight
        wp1 = lin(keys[4], h, h)             # predictor Linear 1
        wp2 = lin(keys[5], h, h)             # predictor Linear 2
        wp3 = lin(keys[6], h, 1)             # predictor Linear 3 (score)

        def pad_w(w):                        # zero-pad to (LANE, LANE), bf16
            out = jnp.zeros((LANE, LANE), jnp.float32)
            return out.at[:w.shape[0], :w.shape[1]].set(w).astype(jnp.bfloat16)

        def pad_b(b):                        # lane-aligned (1, LANE) f32 bias
            return jnp.zeros((1, LANE), jnp.float32).at[0, :b.shape[0]].set(b)

        # Deterministic fixed neighborhood: node i -> {(i+1)%N, (i+2)%N, (i+5)%N}
        # TODO(synk): stands in for GPU neighbor sampling + edge-hashset exclusion.
        idx = jnp.arange(num_nodes)
        adj = jnp.zeros((num_nodes, num_nodes), jnp.float32)
        for off in (1, 2, 5):
            adj = adj + jax.nn.one_hot((idx + off) % num_nodes, num_nodes,
                                       dtype=jnp.float32)
        adj = adj / jnp.maximum(adj.sum(axis=1, keepdims=True), 1.0)  # mean agg

        # TODO(synk): SAGEConv / Linear bias init values of the PyTorch model are
        # not reproduced here; biases are zero (functional stand-in).
        zeros_h = jnp.zeros((h,), jnp.float32)
        self.params = {
            "adj": adj.astype(jnp.bfloat16),
            "wn1": pad_w(wn1), "ws1": pad_w(ws1), "b1": pad_b(zeros_h),
            "wn2": pad_w(wn2), "ws2": pad_w(ws2), "b2": pad_b(zeros_h),
            "wp1": pad_w(wp1), "bp1": pad_b(zeros_h),
            "wp2": pad_w(wp2), "bp2": pad_b(zeros_h),
            "wp3": pad_w(wp3), "bp3": pad_b(jnp.zeros((1,), jnp.float32)),
        }

    def __call__(self, node_feat, src_ids, pos_dst_ids, neg_dst_ids):
        return _forward(self.params, node_feat, src_ids, pos_dst_ids, neg_dst_ids)


# ----------------------------------------------------------------------------
if __name__ == "__main__":
    key = jax.random.PRNGKey(0)
    k_feat, k_src, k_pos, k_neg, k_model = jax.random.split(key, 5)

    num_nodes = 64
    in_feat_dim = 16
    hidden_feat_dim = 32
    num_layer = 2
    id_count = 8

    node_feat = jax.random.normal(k_feat, (num_nodes, in_feat_dim), jnp.float32)
    src_ids = jax.random.randint(k_src, (id_count,), 0, num_nodes, jnp.int32)
    pos_dst_ids = jax.random.randint(k_pos, (id_count,), 0, num_nodes, jnp.int32)
    neg_dst_ids = jax.random.randint(k_neg, (id_count,), 0, num_nodes, jnp.int32)

    model = EdgePredictionGNNModelJAX(num_nodes, in_feat_dim, hidden_feat_dim,
                                      num_layer, k_model)

    pos_scores, neg_scores = model(node_feat, src_ids, pos_dst_ids, neg_dst_ids)
    jax.block_until_ready((pos_scores, neg_scores))

    assert pos_scores.shape == (id_count, 1)
    assert neg_scores.shape == (id_count, 1)
    assert bool(jnp.all(jnp.isfinite(pos_scores)))
    assert bool(jnp.all(jnp.isfinite(neg_scores)))

    # Tolerance-asserted pure-JAX reference (same bf16/f32 mixed precision).
    ref_pos, ref_neg = _reference_forward(model.params, node_feat,
                                          src_ids, pos_dst_ids, neg_dst_ids)
    np.testing.assert_allclose(np.asarray(pos_scores), np.asarray(ref_pos),
                               rtol=5e-2, atol=5e-2)
    np.testing.assert_allclose(np.asarray(neg_scores), np.asarray(ref_neg),
                               rtol=5e-2, atol=5e-2)

    print("KERNEL_OK")
</pallas_src>

<mosaic_0001>
module attributes {stable_mosaic.version = 11 : i64} {
  func.func @_fused_gnn_kernel(%arg0: memref<24x1xi32, #tpu.memory_space<vmem>>, %arg1: memref<64x128xbf16, #tpu.memory_space<vmem>>, %arg2: memref<64x64xbf16, #tpu.memory_space<vmem>>, %arg3: memref<128x128xbf16, #tpu.memory_space<vmem>>, %arg4: memref<128x128xbf16, #tpu.memory_space<vmem>>, %arg5: memref<1x128xf32, #tpu.memory_space<vmem>>, %arg6: memref<128x128xbf16, #tpu.memory_space<vmem>>, %arg7: memref<128x128xbf16, #tpu.memory_space<vmem>>, %arg8: memref<1x128xf32, #tpu.memory_space<vmem>>, %arg9: memref<128x128xbf16, #tpu.memory_space<vmem>>, %arg10: memref<1x128xf32, #tpu.memory_space<vmem>>, %arg11: memref<128x128xbf16, #tpu.memory_space<vmem>>, %arg12: memref<1x128xf32, #tpu.memory_space<vmem>>, %arg13: memref<128x128xbf16, #tpu.memory_space<vmem>>, %arg14: memref<1x128xf32, #tpu.memory_space<vmem>>, %arg15: memref<16x128xf32, #tpu.memory_space<vmem>>) attributes {dimension_semantics = [], scalar_prefetch = 0 : i64, scratch_operands = 0 : i64, tpu.core_type = #tpu.core_type<tc>} {
    %c0 = arith.constant 0 : index
    %c0_0 = arith.constant 0 : index
    %0 = vector.load %arg1[%c0, %c0_0] : memref<64x128xbf16, #tpu.memory_space<vmem>>, vector<64x128xbf16>
    %c0_1 = arith.constant 0 : index
    %c0_2 = arith.constant 0 : index
    %1 = vector.load %arg2[%c0_1, %c0_2] : memref<64x64xbf16, #tpu.memory_space<vmem>>, vector<64x64xbf16>
    %cst = arith.constant dense<0.000000e+00> : vector<64x128xf32>
    %2 = tpu.matmul %1, %0, %cst {dimension_numbers = #tpu.dot_dimension_numbers<[1], [0], [0], [1], [0, 0, 1, 1], [], []>} : vector<64x64xbf16>, vector<64x128xbf16>, vector<64x128xf32> -> vector<64x128xf32>
    %3 = arith.truncf %2 : vector<64x128xf32> to vector<64x128xbf16>
    %c0_3 = arith.constant 0 : index
    %c0_4 = arith.constant 0 : index
    %4 = vector.load %arg3[%c0_3, %c0_4] : memref<128x128xbf16, #tpu.memory_space<vmem>>, vector<128x128xbf16>
    %cst_5 = arith.constant dense<0.000000e+00> : vector<64x128xf32>
    %5 = tpu.matmul %3, %4, %cst_5 {dimension_numbers = #tpu.dot_dimension_numbers<[1], [0], [0], [1], [0, 0, 1, 1], [], []>} : vector<64x128xbf16>, vector<128x128xbf16>, vector<64x128xf32> -> vector<64x128xf32>
    %c0_6 = arith.constant 0 : index
    %c0_7 = arith.constant 0 : index
    %6 = vector.load %arg4[%c0_6, %c0_7] : memref<128x128xbf16, #tpu.memory_space<vmem>>, vector<128x128xbf16>
    %cst_8 = arith.constant dense<0.000000e+00> : vector<64x128xf32>
    %7 = tpu.matmul %0, %6, %cst_8 {dimension_numbers = #tpu.dot_dimension_numbers<[1], [0], [0], [1], [0, 0, 1, 1], [], []>} : vector<64x128xbf16>, vector<128x128xbf16>, vector<64x128xf32> -> vector<64x128xf32>
    %8 = arith.addf %5, %7 : vector<64x128xf32>
    %c0_9 = arith.constant 0 : index
    %c0_10 = arith.constant 0 : index
    %9 = vector.load %arg5[%c0_9, %c0_10] : memref<1x128xf32, #tpu.memory_space<vmem>>, vector<1x128xf32>
    %10 = vector.broadcast %9 : vector<1x128xf32> to vector<64x128xf32>
    %11 = arith.addf %8, %10 : vector<64x128xf32>
    %cst_11 = arith.constant 0.000000e+00 : f32
    %12 = vector.broadcast %cst_11 : f32 to vector<64x128xf32>
    %13 = arith.maximumf %11, %12 : vector<64x128xf32>
    %14 = arith.truncf %13 : vector<64x128xf32> to vector<64x128xbf16>
    %cst_12 = arith.constant dense<0.000000e+00> : vector<64x128xf32>
    %15 = tpu.matmul %1, %14, %cst_12 {dimension_numbers = #tpu.dot_dimension_numbers<[1], [0], [0], [1], [0, 0, 1, 1], [], []>} : vector<64x64xbf16>, vector<64x128xbf16>, vector<64x128xf32> -> vector<64x128xf32>
    %16 = arith.truncf %15 : vector<64x128xf32> to vector<64x128xbf16>
    %c0_13 = arith.constant 0 : index
    %c0_14 = arith.constant 0 : index
    %17 = vector.load %arg6[%c0_13, %c0_14] : memref<128x128xbf16, #tpu.memory_space<vmem>>, vector<128x128xbf16>
    %cst_15 = arith.constant dense<0.000000e+00> : vector<64x128xf32>
    %18 = tpu.matmul %16, %17, %cst_15 {dimension_numbers = #tpu.dot_dimension_numbers<[1], [0], [0], [1], [0, 0, 1, 1], [], []>} : vector<64x128xbf16>, vector<128x128xbf16>, vector<64x128xf32> -> vector<64x128xf32>
    %c0_16 = arith.constant 0 : index
    %c0_17 = arith.constant 0 : index
    %19 = vector.load %arg7[%c0_16, %c0_17] : memref<128x128xbf16, #tpu.memory_space<vmem>>, vector<128x128xbf16>
    %cst_18 = arith.constant dense<0.000000e+00> : vector<64x128xf32>
    %20 = tpu.matmul %14, %19, %cst_18 {dimension_numbers = #tpu.dot_dimension_numbers<[1], [0], [0], [1], [0, 0, 1, 1], [], []>} : vector<64x128xbf16>, vector<128x128xbf16>, vector<64x128xf32> -> vector<64x128xf32>
    %21 = arith.addf %18, %20 : vector<64x128xf32>
    %c0_19 = arith.constant 0 : index
    %c0_20 = arith.constant 0 : index
    %22 = vector.load %arg8[%c0_19, %c0_20] : memref<1x128xf32, #tpu.memory_space<vmem>>, vector<1x128xf32>
    %23 = vector.broadcast %22 : vector<1x128xf32> to vector<64x128xf32>
    %24 = arith.addf %21, %23 : vector<64x128xf32>
    %25 = arith.truncf %24 : vector<64x128xf32> to vector<64x128xbf16>
    %c0_21 = arith.constant 0 : index
    %c0_22 = arith.constant 0 : index
    %26 = vector.load %arg0[%c0_21, %c0_22] : memref<24x1xi32, #tpu.memory_space<vmem>>, vector<24x1xi32>
    %27 = tpu.iota {dimensions = array<i32: 1>} : vector<24x64xi32>
    %28 = vector.broadcast %26 : vector<24x1xi32> to vector<24x64xi32>
    %29 = arith.cmpi eq, %27, %28 : vector<24x64xi32>
    %cst_23 = arith.constant 1.000000e+00 : f32
    %cst_24 = arith.constant 0.000000e+00 : f32
    %30 = vector.broadcast %cst_23 : f32 to vector<24x64xf32>
    %31 = vector.broadcast %cst_24 : f32 to vector<24x64xf32>
    %32 = arith.select %29, %30, %31 : vector<24x64xi1>, vector<24x64xf32>
    %33 = arith.truncf %32 : vector<24x64xf32> to vector<24x64xbf16>
    %cst_25 = arith.constant dense<0.000000e+00> : vector<24x128xf32>
    %34 = tpu.matmul %33, %25, %cst_25 {dimension_numbers = #tpu.dot_dimension_numbers<[1], [0], [0], [1], [0, 0, 1, 1], [], []>} : vector<24x64xbf16>, vector<64x128xbf16>, vector<24x128xf32> -> vector<24x128xf32>
    %35 = vector.extract_strided_slice %34 {offsets = [0, 0], sizes = [8, 128], strides = [1, 1]} : vector<24x128xf32> to vector<8x128xf32>
    %36 = vector.extract_strided_slice %34 {offsets = [8, 0], sizes = [8, 128], strides = [1, 1]} : vector<24x128xf32> to vector<8x128xf32>
    %37 = vector.extract_strided_slice %34 {offsets = [16, 0], sizes = [8, 128], strides = [1, 1]} : vector<24x128xf32> to vector<8x128xf32>
    %38 = arith.mulf %35, %36 : vector<8x128xf32>
    %39 = arith.mulf %35, %37 : vector<8x128xf32>
    %40 = tpu.concatenate %38, %39 in 0 : vector<8x128xf32>, vector<8x128xf32> -> vector<16x128xf32>
    %41 = arith.truncf %40 : vector<16x128xf32> to vector<16x128xbf16>
    %c0_26 = arith.constant 0 : index
    %c0_27 = arith.constant 0 : index
    %42 = vector.load %arg9[%c0_26, %c0_27] : memref<128x128xbf16, #tpu.memory_space<vmem>>, vector<128x128xbf16>
    %cst_28 = arith.constant dense<0.000000e+00> : vector<16x128xf32>
    %43 = tpu.matmul %41, %42, %cst_28 {dimension_numbers = #tpu.dot_dimension_numbers<[1], [0], [0], [1], [0, 0, 1, 1], [], []>} : vector<16x128xbf16>, vector<128x128xbf16>, vector<16x128xf32> -> vector<16x128xf32>
    %c0_29 = arith.constant 0 : index
    %c0_30 = arith.constant 0 : index
    %44 = vector.load %arg10[%c0_29, %c0_30] : memref<1x128xf32, #tpu.memory_space<vmem>>, vector<1x128xf32>
    %45 = vector.broadcast %44 : vector<1x128xf32> to vector<16x128xf32>
    %46 = arith.addf %43, %45 : vector<16x128xf32>
    %cst_31 = arith.constant 0.000000e+00 : f32
    %47 = vector.broadcast %cst_31 : f32 to vector<16x128xf32>
    %48 = arith.maximumf %46, %47 : vector<16x128xf32>
    %49 = arith.truncf %48 : vector<16x128xf32> to vector<16x128xbf16>
    %c0_32 = arith.constant 0 : index
    %c0_33 = arith.constant 0 : index
    %50 = vector.load %arg11[%c0_32, %c0_33] : memref<128x128xbf16, #tpu.memory_space<vmem>>, vector<128x128xbf16>
    %cst_34 = arith.constant dense<0.000000e+00> : vector<16x128xf32>
    %51 = tpu.matmul %49, %50, %cst_34 {dimension_numbers = #tpu.dot_dimension_numbers<[1], [0], [0], [1], [0, 0, 1, 1], [], []>} : vector<16x128xbf16>, vector<128x128xbf16>, vector<16x128xf32> -> vector<16x128xf32>
    %c0_35 = arith.constant 0 : index
    %c0_36 = arith.constant 0 : index
    %52 = vector.load %arg12[%c0_35, %c0_36] : memref<1x128xf32, #tpu.memory_space<vmem>>, vector<1x128xf32>
    %53 = vector.broadcast %52 : vector<1x128xf32> to vector<16x128xf32>
    %54 = arith.addf %51, %53 : vector<16x128xf32>
    %cst_37 = arith.constant 0.000000e+00 : f32
    %55 = vector.broadcast %cst_37 : f32 to vector<16x128xf32>
    %56 = arith.maximumf %54, %55 : vector<16x128xf32>
    %57 = arith.truncf %56 : vector<16x128xf32> to vector<16x128xbf16>
    %c0_38 = arith.constant 0 : index
    %c0_39 = arith.constant 0 : index
    %58 = vector.load %arg13[%c0_38, %c0_39] : memref<128x128xbf16, #tpu.memory_space<vmem>>, vector<128x128xbf16>
    %cst_40 = arith.constant dense<0.000000e+00> : vector<16x128xf32>
    %59 = tpu.matmul %57, %58, %cst_40 {dimension_numbers = #tpu.dot_dimension_numbers<[1], [0], [0], [1], [0, 0, 1, 1], [], []>} : vector<16x128xbf16>, vector<128x128xbf16>, vector<16x128xf32> -> vector<16x128xf32>
    %c0_41 = arith.constant 0 : index
    %c0_42 = arith.constant 0 : index
    %60 = vector.load %arg14[%c0_41, %c0_42] : memref<1x128xf32, #tpu.memory_space<vmem>>, vector<1x128xf32>
    %61 = vector.broadcast %60 : vector<1x128xf32> to vector<16x128xf32>
    %62 = arith.addf %59, %61 : vector<16x128xf32>
    %c0_43 = arith.constant 0 : index
    %c0_44 = arith.constant 0 : index
    %63 = vector.load %arg15[%c0_43, %c0_44] : memref<16x128xf32, #tpu.memory_space<vmem>>, vector<16x128xf32>
    tpu.vector_store %arg15[%c0_43, %c0_44], %62 {strides = array<i32>} : memref<16x128xf32, #tpu.memory_space<vmem>>, vector<16x128xf32>,
    return
  }
}

</mosaic_0001>

<bundles_post_ra>
// kernel: _forward.1
= control target key start
LH: loop header
LB: loop body
LE: loop exit
PB: predicated region body
PF: predicated region fallthrough
CT: control target
= control target key end

     0   :  { %20 = vsyncpa [#allocation3], 0  ;;  %s2307_s0 = inlined_call_operand.vmem [shape: s32[24,1], index: 0, kind: input, shape index: {}]   ;;  %s2308_s1 = inlined_call_operand.vmem [shape: bf16[64,128], index: 1, kind: input, shape index: {}]   ;;  %s2309_s2 = inlined_call_operand.vmem [shape: bf16[64,64], index: 2, kind: input, shape index: {}]   ;;  %s2310_s3 = inlined_call_operand.vmem [shape: bf16[128,128], index: 3, kind: input, shape index: {}]   ;;  %s2311_s4 = inlined_call_operand.vmem [shape: bf16[128,128], index: 4, kind: input, shape index: {}]   ;;  %s2312_s5 = inlined_call_operand.vmem [shape: f32[1,128], index: 5, kind: input, shape index: {}]   ;;  %s2313_s6 = inlined_call_operand.vmem [shape: bf16[128,128], index: 6, kind: input, shape index: {}]   ;;  %s2314_s7 = inlined_call_operand.hbm [shape: bf16[128,128], index: 7, kind: input, shape index: {}]   ;;  %s2315_s8 = inlined_call_operand.vmem [shape: f32[1,128], index: 8, kind: input, shape index: {}]   ;;  %s2316_s9 = inlined_call_operand.hbm [shape: bf16[128,128], index: 9, kind: input, shape index: {}]   ;;  %s2317_s10 = inlined_call_operand.vmem [shape: f32[1,128], index: 10, kind: input, shape index: {}]   ;;  %s2318_s11 = inlined_call_operand.hbm [shape: bf16[128,128], index: 11, kind: input, shape index: {}]   ;;  %s2319_s12 = inlined_call_operand.hbm [shape: f32[1,128], index: 12, kind: input, shape index: {}]   ;;  %s2320_s13 = inlined_call_operand.hbm [shape: bf16[128,128], index: 13, kind: input, shape index: {}]   ;;  %s2321_s14 = inlined_call_operand.hbm [shape: f32[1,128], index: 14, kind: input, shape index: {}]   ;;  %s2322_s15 = inlined_call_operand.vmem [shape: f32[16,128], index: 15, kind: output, shape index: {}]  }
   0x1   :  { %21 = vsyncpa [#allocation5], 0 }
   0x2   :  { %22 = vsyncpa [#allocation8], 0 }
   0x3   :  { %23 = vsyncpa [#allocation11], 0  ;;  %s1942_s18 = smov [#allocation4]   ;;  %s1943_s20 = smov [#allocation7]  }
   0x4   :  { %s57_s19 = sshll.u32 %s1942_s18, 4  ;;  %s84_s21 = sshll.u32 %s1943_s20, 4  ;;  %s58_s19 = int_to_ptr.vmem [resolvable:$true] %s57_s19  ;;  %s2033_s21 = int_to_ptr.vmem [resolvable:$true] %s84_s21 }
   0x5   :  { %s1802_s24 = scalar_lea.hbm %s2316_s9, 1024 }
   0x6   :  { %p1803_p0 = scmp.ne.s32.totalorder %s2316_s9, %s1802_s24  ;;  %p1806_p1 = scmp.lt.u32.totalorder %s1802_s24, %s2316_s9 }
   0x8   :  { %p1808_p2 = pnand %p1806_p1, %p1803_p0 }
   0xa   :  { %1811 = shalt.err (!%p1808_p2)
}
   0xb   :  { %s1812_s29 = scalar_lea.vmem %s58_s19, 1024  ;;  %p1817_p4 = scmp.lt.s32.totalorder %s58_s19, %s58_s19 }
   0xc   :  { %p1813_p3 = scmp.ne.s32.totalorder %s58_s19, %s1812_s29  ;;  %p1818_p5 = scmp.lt.s32.totalorder %s1812_s29, %s1812_s29 }
   0xe   :  { %p1819_p6 = por %p1818_p5, %p1817_p4 }
  0x10   :  { %p1820_p7 = pnand %p1819_p6, %p1813_p3 }
  0x12   :  { %1823 = shalt.err (!%p1820_p7)
}
  0x13   :  { %s1944_s30 = smov 64   ;;  %s1945_s16 = smov 4  }
  0x14   :  { %63 = dma.hbm_to_vmem [thread:$0]  %s2316_s9, 1024, %s58_s19, [#allocation5], %s1944_s30, %s1944_s30, %s1945_s16  }
  0x15   :  { %s1824_s23 = scalar_lea.hbm %s2319_s12, 16 }
  0x16   :  { %p1825_p8 = scmp.ne.s32.totalorder %s2319_s12, %s1824_s23  ;;  %p1828_p9 = scmp.lt.u32.totalorder %s1824_s23, %s2319_s12 }
  0x18   :  { %p1830_p10 = pnand %p1828_p9, %p1825_p8 }
  0x1a   :  { %1833 = shalt.err (!%p1830_p10)
}
  0x1b   :  { %s1834_s28 = scalar_lea.vmem %s2033_s21, 16  ;;  %s1838_s9 = scalar_lea.vmem %s2033_s21, 32 }
  0x1c   :  { %p1835_p11 = scmp.ne.s32.totalorder %s2033_s21, %s1834_s28  ;;  %p1839_p12 = scmp.lt.s32.totalorder %s2033_s21, %s2033_s21 }
  0x1d   :  { %p1840_p13 = scmp.lt.s32.totalorder %s1838_s9, %s1834_s28 }
  0x1f   :  { %p1841_p0 = por %p1840_p13, %p1839_p12 }
  0x21   :  { %p1842_p1 = pnand %p1841_p0, %p1835_p11 }
  0x23   :  { %1845 = shalt.err (!%p1842_p1)
}
  0x24   :  { %87 = dma.hbm_to_vmem [thread:$0]  %s2319_s12, 16, %s2033_s21, [#allocation8]  }
  0x25   :  { %s1946_s17 = smov [#allocation2]   ;;  %s1947_s20 = smov [#allocation6]  }
  0x26   :  { %s43_s18 = sshll.u32 %s1946_s17, 4  ;;  %s71_s22 = sshll.u32 %s1947_s20, 4  ;;  %s44_s18 = int_to_ptr.vmem [resolvable:$true] %s43_s18  ;;  %s2068_s22 = int_to_ptr.vmem [resolvable:$true] %s71_s22 }
  0x27   :  { %s1846_s25 = scalar_lea.hbm %s2314_s7, 1024 }
  0x28   :  { %p1847_p2 = scmp.ne.s32.totalorder %s2314_s7, %s1846_s25  ;;  %p1850_p3 = scmp.lt.u32.totalorder %s1846_s25, %s2314_s7 }
  0x2a   :  { %p1852_p4 = pnand %p1850_p3, %p1847_p2 }
  0x2c   :  { %1855 = shalt.err (!%p1852_p4)
}
  0x2d   :  { %s1856_s12 = scalar_lea.vmem %s44_s18, 1024  ;;  %p1861_p6 = scmp.lt.s32.totalorder %s44_s18, %s44_s18 }
  0x2e   :  { %p1857_p5 = scmp.ne.s32.totalorder %s44_s18, %s1856_s12  ;;  %p1862_p7 = scmp.lt.s32.totalorder %s1856_s12, %s1856_s12 }
  0x30   :  { %p1863_p8 = por %p1862_p7, %p1861_p6 }
  0x32   :  { %p1864_p9 = pnand %p1863_p8, %p1857_p5 }
  0x34   :  { %1867 = shalt.err (!%p1864_p9)
}
  0x35   :  { %49 = dma.hbm_to_vmem [thread:$0]  %s2314_s7, 1024, %s44_s18, [#allocation3], %s1944_s30, %s1944_s30, %s1945_s16  }
  0x36   :  { %s1868_s20 = scalar_lea.hbm %s2318_s11, 1024 }
  0x37   :  { %p1869_p10 = scmp.ne.s32.totalorder %s2318_s11, %s1868_s20  ;;  %p1872_p11 = scmp.lt.u32.totalorder %s1868_s20, %s2318_s11 }
  0x39   :  { %p1874_p12 = pnand %p1872_p11, %p1869_p10 }
  0x3b   :  { %1877 = shalt.err (!%p1874_p12)
}
  0x3c   :  { %s1878_s27 = scalar_lea.vmem %s2068_s22, 1024  ;;  %p1883_p0 = scmp.lt.s32.totalorder %s2068_s22, %s2068_s22 }
  0x3d   :  { %p1879_p13 = scmp.ne.s32.totalorder %s2068_s22, %s1878_s27  ;;  %p1884_p1 = scmp.lt.s32.totalorder %s1878_s27, %s1878_s27 }
  0x3f   :  { %p1885_p2 = por %p1884_p1, %p1883_p0 }
  0x41   :  { %p1886_p3 = pnand %p1885_p2, %p1879_p13 }
  0x43   :  { %1889 = shalt.err (!%p1886_p3)
}
  0x44   :  { %77 = dma.hbm_to_vmem [thread:$0]  %s2318_s11, 1024, %s2068_s22, [#allocation5], %s1944_s30, %s1944_s30, %s1945_s16  }
  0x45   :  { %s1948_s28 = smov [#allocation9]   ;;  %s1949_s12 = smov [#allocation10]  }
  0x46   :  { %s93_s9 = sshll.u32 %s1948_s28, 4  ;;  %s106_s21 = sshll.u32 %s1949_s12, 4  ;;  %s94_s9 = int_to_ptr.vmem [resolvable:$true] %s93_s9  ;;  %s107_s21 = int_to_ptr.vmem [resolvable:$true] %s106_s21 }
  0x47   :  { %s1890_s17 = scalar_lea.hbm %s2320_s13, 1024 }
  0x48   :  { %p1891_p4 = scmp.ne.s32.totalorder %s2320_s13, %s1890_s17  ;;  %p1894_p5 = scmp.lt.u32.totalorder %s1890_s17, %s2320_s13 }
  0x4a   :  { %p1896_p6 = pnand %p1894_p5, %p1891_p4 }
  0x4c   :  { %1899 = shalt.err (!%p1896_p6)
}
  0x4d   :  { %s1900_s11 = scalar_lea.vmem %s94_s9, 1024  ;;  %p1905_p8 = scmp.lt.s32.totalorder %s94_s9, %s94_s9 }
  0x4e   :  { %p1901_p7 = scmp.ne.s32.totalorder %s94_s9, %s1900_s11  ;;  %p1906_p9 = scmp.lt.s32.totalorder %s1900_s11, %s1900_s11 }
  0x50   :  { %p1907_p10 = por %p1906_p9, %p1905_p8 }
  0x52   :  { %p1908_p11 = pnand %p1907_p10, %p1901_p7 }
  0x54   :  { %1911 = shalt.err (!%p1908_p11)
}
  0x55   :  { %99 = dma.hbm_to_vmem [thread:$0]  %s2320_s13, 1024, %s94_s9, [#allocation8], %s1944_s30, %s1944_s30, %s1945_s16  }
  0x56   :  { %s1912_s18 = scalar_lea.hbm %s2321_s14, 16 }
  0x57   :  { %p1913_p12 = scmp.ne.s32.totalorder %s2321_s14, %s1912_s18  ;;  %p1916_p13 = scmp.lt.u32.totalorder %s1912_s18, %s2321_s14 }
  0x59   :  { %p1918_p0 = pnand %p1916_p13, %p1913_p12 }
  0x5b   :  { %1921 = shalt.err (!%p1918_p0)
}
  0x5c   :  { %s1922_s17 = scalar_lea.vmem %s107_s21, 16  ;;  %s1926_s20 = scalar_lea.vmem %s107_s21, 32 }
  0x5d   :  { %p1923_p1 = scmp.ne.s32.totalorder %s107_s21, %s1922_s17  ;;  %p1927_p2 = scmp.lt.s32.totalorder %s107_s21, %s107_s21 }
  0x5e   :  { %p1928_p3 = scmp.lt.s32.totalorder %s1926_s20, %s1922_s17 }
  0x60   :  { %p1929_p4 = por %p1928_p3, %p1927_p2 }
  0x62   :  { %p1930_p5 = pnand %p1929_p4, %p1923_p1 }
  0x64   :  { %1933 = shalt.err (!%p1930_p5)
}
  0x65   :  { %109 = dma.hbm_to_vmem [thread:$0]  %s2321_s14, 16, %s107_s21, [#allocation11]  }
  0x66   :  { %1934 = dma.done.wait [#allocation3], 1024  }
  0x67   :  { %1935 = vsyncadd [#allocation3], 4294966272 }
  0x68   :  { %1936 = dma.done.wait [#allocation5], 2048  }
  0x69   :  { %1937 = vsyncadd [#allocation5], 4294965248 }
  0x6a   :  { %1938 = dma.done.wait [#allocation8], 1040  }
  0x6b   :  { %1939 = vsyncadd [#allocation8], 4294966256 }
  0x6c   :  { %1940 = dma.done.wait [#allocation11], 16  }
  0x6d   :  { %1941 = vsyncadd [#allocation11], 4294967280  ;;  %v1738_v0 = vld [vmem:[%s2308_s1] sm:$0xff]   ;;  %v1739_v1 = vld [vmem:[%s2308_s1 + $0x8] sm:$0xff]   ;;  %vm189_vm0 = vcmask 523264   ;;  %vm1952_vm4 = vmmov 0  }
  0x6e   :  { %1509 = vmatprep.subr.bf16.mxu0 %v1738_v0  ;;  %1541 = vmatprep.mubr.bf16.mxu1 %v1738_v0  ;;  %v1740_v2 = vld [vmem:[%s2308_s1 + $0x10] sm:$0xff]   ;;  %v1742_v3 = vld [vmem:[%s2309_s2] sm:$0xff]   ;;  %v1741_v4 = vld [vmem:[%s2308_s1 + $0x18] sm:$0xff]  }
  0x6f   :  { %1510 = vmatpush3.bf16.msra.mxu0 %v1738_v0  ;;  %1517 = vmatprep.mubr.msk.bf16.mxu0 %vm189_vm0, %v1742_v3  ;;  %v1746_v5 = vld [vmem:[%s2311_s4] sm:$0xff]   ;;  %v1747_v6 = vld [vmem:[%s2311_s4 + $0x8] sm:$0xff]   ;;  %v1748_v7 = vld [vmem:[%s2311_s4 + $0x10] sm:$0xff]  }
  0x70   :  { %1511 = vmatprep.subr.bf16.mxu0 %v1739_v1  ;;  %1525 = vmatprep.subr.bf16.mxu1 %v1746_v5  ;;  %v2160_v8 = vld [vmem:[%s2309_s2 + $0x8] sm:$0xff]   ;;  %v2165_v9 = vld [vmem:[%s2309_s2 + $0x10] sm:$0xff]   ;;  %v1749_v10 = vld [vmem:[%s2311_s4 + $0x18] sm:$0xff]  }
  0x71   :  { %1526 = vmatpush3.bf16.msra.mxu1 %v1746_v5  ;;  %v1750_v11 = vld [vmem:[%s2311_s4 + $0x20] sm:$0xff]   ;;  %v2180_v12 = vld [vmem:[%s2309_s2 + $0x18] sm:$0xff]   ;;  %v1751_v13 = vld [vmem:[%s2311_s4 + $0x28] sm:$0xff]  }
  0x72   :  { %1527 = vmatprep.subr.bf16.mxu1 %v1747_v6  ;;  %v1752_v14 = vld [vmem:[%s2311_s4 + $0x30] sm:$0xff]   ;;  %v1753_v15 = vld [vmem:[%s2311_s4 + $0x38] sm:$0xff]   ;;  %v1754_v16 = vld [vmem:[%s2310_s3] sm:$0xff]  }
  0x73   :  { %1512 = vmatpush3.bf16.msra.mxu0 %v1739_v1  ;;  %v1755_v17 = vld [vmem:[%s2310_s3 + $0x8] sm:$0xff]   ;;  %v1756_v18 = vld [vmem:[%s2310_s3 + $0x10] sm:$0xff]   ;;  %v1757_v19 = vld [vmem:[%s2310_s3 + $0x18] sm:$0xff]  }
  0x74   :  { %1513 = vmatprep.subr.bf16.mxu0 %v1740_v2  ;;  %v1758_v20 = vld [vmem:[%s2310_s3 + $0x20] sm:$0xff]   ;;  %v1759_v21 = vld [vmem:[%s2310_s3 + $0x28] sm:$0xff]   ;;  %v1760_v22 = vld [vmem:[%s2310_s3 + $0x30] sm:$0xff]  }
  0x75   :  { %1528 = vmatpush3.bf16.msra.mxu1 %v1747_v6  ;;  %v1761_v23 = vld [vmem:[%s2310_s3 + $0x38] sm:$0xff]   ;;  %v1361_v36 = vld [vmem:[%s2312_s5] ss:$0 sm:$0xff]  ;;  %v1767_v6 = vld [vmem:[#allocation2 + $0x28] sm:$0xff]  }
  0x76   :  { %1529 = vmatprep.subr.bf16.mxu1 %v1748_v7  ;;  %v1766_v5 = vld [vmem:[#allocation2 + $0x20] sm:$0xff]  }
  0x77   :  { %1514 = vmatpush3.bf16.msra.mxu0 %v1740_v2 }
  0x78   :  { %1515 = vmatprep.subr.bf16.mxu0 %v1741_v4 }
  0x79   :  { %1530 = vmatpush3.bf16.msra.mxu1 %v1748_v7  ;;  %v1768_v7 = vld [vmem:[#allocation2 + $0x30] sm:$0xff]  }
  0x7a   :  { %1531 = vmatprep.subr.bf16.mxu1 %v1749_v10 }
  0x7b   :  { %1516 = vmatpush3.bf16.msra.mxu0 %v1741_v4 }
  0x7d   :  { %1532 = vmatpush3.bf16.msra.mxu1 %v1749_v10  ;;  %v1771_v10 = vld [vmem:[%s2313_s6 + $0x8] sm:$0xff]  }
  0x7e   :  { %1518 = vmatmul.mubr.msk.bf16.vlgmr.msra.gmra.mrb[0].mxu0 %vm189_vm0, %v2160_v8  ;;  %1533 = vmatprep.subr.bf16.mxu1 %v1750_v11 }
  0x7f   :  { %1521 = vmatprep.mubr.msk.bf16.mxu0 %vm189_vm0, %v2165_v9 }
  0x81   :  { %1534 = vmatpush3.bf16.msra.mxu1 %v1750_v11  ;;  %v1772_v11 = vld [vmem:[%s2313_s6 + $0x10] sm:$0xff]  }
  0x82   :  { %1535 = vmatprep.subr.bf16.mxu1 %v1751_v13 }
  0x85   :  { %1536 = vmatpush3.bf16.msra.mxu1 %v1751_v13  ;;  %v1774_v13 = vld [vmem:[%s2313_s6 + $0x20] sm:$0xff]  }
  0x86   :  { %1522 = vmatmul.mubr.msk.bf16.gmra.mrb[4].mxu0 %vm189_vm0, %v2180_v12  ;;  %1537 = vmatprep.subr.bf16.mxu1 %v1752_v14 }
  0x87   :  { %1581 = vmatprep.mubr.msk.bf16.mxu0 %vm189_vm0, %v1742_v3  ;;  %v1764_v3 = vld [vmem:[#allocation2 + $0x10] sm:$0xff]  }
  0x89   :  { %1538 = vmatpush3.bf16.msra.mxu1 %v1752_v14  ;;  %v1775_v14 = vld [vmem:[%s2313_s6 + $0x28] sm:$0xff]  }
  0x8a   :  { %1539 = vmatprep.subr.bf16.mxu1 %v1753_v15 }
  0x8d   :  { %1540 = vmatpush3.bf16.msra.mxu1 %v1753_v15  ;;  %v1776_v15 = vld [vmem:[%s2313_s6 + $0x30] sm:$0xff]  }
  0x8e   :  { %1549 = vmatprep.subr.bf16.mxu1 %v1754_v16 }
  0x90   :  { %1542 = vmatmul.mubr.bf16.vlgmr.msra.gmra.mrb[0].mxu1 %v1739_v1  ;;  %v1762_v1 = vld [vmem:[#allocation2] sm:$0xff]  }
  0x91   :  { %1550 = vmatpush3.bf16.msra.mxu1 %v1754_v16  ;;  %1545 = vmatprep.mubr.bf16.mxu1 %v1740_v2  ;;  %v1763_v2 = vld [vmem:[#allocation2 + $0x8] sm:$0xff]   ;;  %v1777_v16 = vld [vmem:[%s2313_s6 + $0x38] sm:$0xff]  }
  0x92   :  { %1551 = vmatprep.subr.bf16.mxu1 %v1755_v17 }
  0x95   :  { %1552 = vmatpush3.bf16.msra.mxu1 %v1755_v17  ;;  %v902_v17 = vld [vmem:[%s2307_s0] sm:$0xff] }
  0x96   :  { %1553 = vmatprep.subr.bf16.mxu1 %v1756_v18 }
  0x98   :  { %1546 = vmatmul.mubr.bf16.gmra.mrb[4].mxu1 %v1741_v4  ;;  %v1765_v4 = vld [vmem:[#allocation2 + $0x18] sm:$0xff]  }
  0x99   :  { %1554 = vmatpush3.bf16.msra.mxu1 %v1756_v18  ;;  %v904_v18 = vld [vmem:[%s2307_s0 + $0x10] sm:$0xff] }
  0x9a   :  { %1555 = vmatprep.subr.bf16.mxu1 %v1757_v19 }
  0x9d   :  { %1556 = vmatpush3.bf16.msra.mxu1 %v1757_v19  ;;  %v1950_v19 = vmov 0  }
  0x9e   :  { %1557 = vmatprep.subr.bf16.mxu1 %v1758_v20  ;;  %1736 = vset.pattern.permute.xlu0 %v1950_v19 }
  0x9f   :  { %1737 = vset.pattern.permute.xlu1 %v1950_v19  ;;  %908 = vperm.xlu0 %1736, %v902_v17  }
  0xa0   :  { %914 = vperm.xlu1 %1737, %v904_v18  }
  0xa1   :  { %1558 = vmatpush3.bf16.msra.mxu1 %v1758_v20  ;;  %v903_v20 = vld [vmem:[%s2307_s0 + $0x8] sm:$0xff] }
  0xa2   :  { %1559 = vmatprep.subr.bf16.mxu1 %v1759_v21 }
  0xa3   :  { %911 = vperm.xlu0 %1736, %v903_v20  }
  0xa5   :  { %1560 = vmatpush3.bf16.msra.mxu1 %v1759_v21 }
  0xa6   :  { %1561 = vmatprep.subr.bf16.mxu1 %v1760_v22 }
  0xa9   :  { %1562 = vmatpush3.bf16.msra.mxu1 %v1760_v22 }
  0xaa   :  { %1563 = vmatprep.subr.bf16.mxu1 %v1761_v23 }
  0xad   :  { %1564 = vmatpush3.bf16.msra.mxu1 %v1761_v23 }
 0x151   :  { %v1519_v24 = vpop.f32.mrb[0].mxu0 }
 0x152   :  { %v236_v25 = vpop.f32.mrb[1].mxu0 }
 0x153   :  { %v1520_v26 = vpop.f32.mrb[2].mxu0 }
 0x154   :  { %v268_v27 = vpack.c.bf16 %v1520_v26, %v1519_v24  ;;  %v239_v28 = vpop.f32.mrb[3].mxu0 }
 0x155   :  { %v267_v29 = vpack.c.bf16 %v239_v28, %v236_v25 }
 0x157   :  { %1565 = vmatprep.mubr.bf16.mxu1 %v267_v29 }
 0x158   :  { %1566 = vmatmul.mubr.bf16.vlgmr.msra.gmra.mrb[0].mxu1 %v268_v27 }
 0x159   :  { %v1523_v30 = vpop.f32.mrb[4].mxu0 }
 0x15a   :  { %v252_v31 = vpop.f32.mrb[5].mxu0 }
 0x15b   :  { %v1524_v32 = vpop.f32.mrb[6].mxu0 }
 0x15c   :  { %v270_v33 = vpack.c.bf16 %v1524_v32, %v1523_v30  ;;  %v255_v34 = vpop.f32.mrb[7].mxu0 }
 0x15d   :  { %v269_v35 = vpack.c.bf16 %v255_v34, %v252_v31  ;;  %v905_v34 = vlaneseq }
 0x15f   :  { %1569 = vmatprep.mubr.bf16.mxu1 %v269_v35  ;;  %v906_v35 = vand.u32 127, %v905_v34 }
 0x160   :  { %1570 = vmatmul.mubr.bf16.gmra.mrb[4].mxu1 %v270_v33  ;;  %v909_v33 = vpop.permute.xlu0 %908 }
 0x161   :  { %vm916_vm1 = vcmp.eq.s32.totalorder %v906_v35, %v909_v33 }
 0x22b   :  { %v1567_v37 = vpop.f32.mrb[0].mxu1 }
 0x22c   :  { %v538_v38 = vadd.f32 %v1567_v37, %v1361_v36  ;;  %v498_v39 = vpop.f32.mrb[1].mxu1  ;;  %v1951_v37 = vmov 0.0  }
 0x22d   :  { %v536_v40 = vadd.f32 %v1361_v36, %v498_v39  ;;  %v1568_v41 = vpop.f32.mrb[2].mxu1 }
 0x22e   :  { %v539_v42 = vadd.f32 %v1568_v41, %v1361_v36  ;;  %v501_v43 = vpop.f32.mrb[3].mxu1  ;;  %v546_v45 = vmax.f32 %v538_v38, 0.0  ;;  %v919_v38 = vsel %vm916_vm1, 1.0, %v1951_v37 }
 0x22f   :  { %v537_v44 = vadd.f32 %v1361_v36, %v501_v43  ;;  %v544_v47 = vmax.f32 %v536_v40, 0.0 }
 0x230   :  { %v547_v46 = vmax.f32 %v539_v42, 0.0  ;;  %v1382_v42 = vld [vmem:[%s2315_s8] ss:$0 sm:$0xff] }
 0x231   :  { %v545_v48 = vmax.f32 %v537_v44, 0.0 }
 0x232   :  { %v553_v49 = vpack.c.bf16 %v547_v46, %v546_v45 }
 0x233   :  { %v552_v50 = vpack.c.bf16 %v545_v48, %v544_v47  ;;  %v1571_v51 = vpop.f32.mrb[4].mxu1 }
 0x234   :  { %v542_v52 = vadd.f32 %v1571_v51, %v1361_v36  ;;  %v514_v53 = vpop.f32.mrb[5].mxu1 }
 0x235   :  { %v540_v54 = vadd.f32 %v1361_v36, %v514_v53  ;;  %v1572_v55 = vpop.f32.mrb[6].mxu1  ;;  %1573 = vmatprep.subr.bf16.mxu0 %v552_v50 }
 0x236   :  { %v543_v56 = vadd.f32 %v1572_v55, %v1361_v36  ;;  %v517_v57 = vpop.f32.mrb[7].mxu1  ;;  %1574 = vmatpush3.bf16.msra.mxu0 %v552_v50  ;;  %v550_v59 = vmax.f32 %v542_v52, 0.0 }
 0x237   :  { %v541_v58 = vadd.f32 %v1361_v36, %v517_v57  ;;  %1575 = vmatprep.subr.bf16.mxu0 %v553_v49  ;;  %v548_v61 = vmax.f32 %v540_v54, 0.0  ;;  %v912_v36 = vpop.permute.xlu0 %911 }
 0x238   :  { %v551_v60 = vmax.f32 %v543_v56, 0.0  ;;  %vm917_vm2 = vcmp.eq.s32.totalorder %v906_v35, %v912_v36 }
 0x239   :  { %v549_v62 = vmax.f32 %v541_v58, 0.0  ;;  %v920_v39 = vsel %vm917_vm2, 1.0, %v1951_v37  ;;  %v915_v58 = vpop.permute.xlu1 %914 }
 0x23a   :  { %v555_v63 = vpack.c.bf16 %v551_v60, %v550_v59  ;;  %1576 = vmatpush3.bf16.msra.mxu0 %v553_v49  ;;  %v922_v40 = vpack.c.bf16 %v920_v39, %v919_v38  ;;  %vm918_vm3 = vcmp.eq.s32.totalorder %v906_v35, %v915_v58 }
 0x23b   :  { %v554_v0 = vpack.c.bf16 %v549_v62, %v548_v61 }
 0x23c   :  { %1645 = vmatprep.mubr.msk.bf16.mxu1 %vm189_vm0, %v922_v40 }
 0x23d   :  { %1577 = vmatprep.subr.bf16.mxu0 %v554_v0 }
 0x23e   :  { %1578 = vmatpush3.bf16.msra.mxu0 %v554_v0 }
 0x23f   :  { %1579 = vmatprep.subr.bf16.mxu0 %v555_v63 }
 0x242   :  { %1580 = vmatpush3.bf16.msra.mxu0 %v555_v63 }
 0x243   :  { %1589 = vmatprep.subr.bf16.mxu0 %v1762_v1 }
 0x245   :  { %1582 = vmatmul.mubr.msk.bf16.vlgmr.msra.gmra.mrb[8].mxu0 %vm189_vm0, %v2160_v8  ;;  %v1769_v8 = vld [vmem:[#allocation2 + $0x38] sm:$0xff]  }
 0x246   :  { %1590 = vmatpush3.bf16.msra.mxu0 %v1762_v1  ;;  %1585 = vmatprep.mubr.msk.bf16.mxu0 %vm189_vm0, %v2165_v9  ;;  %v1770_v9 = vld [vmem:[%s2313_s6] sm:$0xff]  }
 0x247   :  { %1591 = vmatprep.subr.bf16.mxu0 %v1763_v2  ;;  %v1778_v1 = vld [vmem:[#allocation4] sm:$0xff]  }
 0x24a   :  { %1592 = vmatpush3.bf16.msra.mxu0 %v1763_v2  ;;  %v1779_v2 = vld [vmem:[#allocation4 + $0x8] sm:$0xff]  }
 0x24b   :  { %1593 = vmatprep.subr.bf16.mxu0 %v1764_v3 }
 0x24d   :  { %1586 = vmatmul.mubr.msk.bf16.gmra.mrb[12].mxu0 %vm189_vm0, %v2180_v12  ;;  %v1773_v12 = vld [vmem:[%s2313_s6 + $0x18] sm:$0xff]  }
 0x24e   :  { %1594 = vmatpush3.bf16.msra.mxu0 %v1764_v3  ;;  %1605 = vmatprep.mubr.bf16.mxu0 %v552_v50  ;;  %v1780_v3 = vld [vmem:[#allocation4 + $0x10] sm:$0xff]  }
 0x24f   :  { %1595 = vmatprep.subr.bf16.mxu0 %v1765_v4 }
 0x252   :  { %1596 = vmatpush3.bf16.msra.mxu0 %v1765_v4  ;;  %v1781_v4 = vld [vmem:[#allocation4 + $0x18] sm:$0xff]  }
 0x253   :  { %1597 = vmatprep.subr.bf16.mxu0 %v1766_v5 }
 0x256   :  { %1598 = vmatpush3.bf16.msra.mxu0 %v1766_v5  ;;  %v1782_v5 = vld [vmem:[#allocation4 + $0x20] sm:$0xff]  }
 0x257   :  { %1599 = vmatprep.subr.bf16.mxu0 %v1767_v6 }
 0x25a   :  { %1600 = vmatpush3.bf16.msra.mxu0 %v1767_v6  ;;  %v1783_v6 = vld [vmem:[#allocation4 + $0x28] sm:$0xff]  }
 0x25b   :  { %1601 = vmatprep.subr.bf16.mxu0 %v1768_v7 }
 0x25e   :  { %1602 = vmatpush3.bf16.msra.mxu0 %v1768_v7  ;;  %v1784_v7 = vld [vmem:[#allocation4 + $0x30] sm:$0xff]  }
 0x25f   :  { %1603 = vmatprep.subr.bf16.mxu0 %v1769_v8 }
 0x262   :  { %1604 = vmatpush3.bf16.msra.mxu0 %v1769_v8  ;;  %v1785_v8 = vld [vmem:[#allocation4 + $0x38] sm:$0xff]  }
 0x263   :  { %1613 = vmatprep.subr.bf16.mxu0 %v1770_v9 }
 0x265   :  { %1606 = vmatmul.mubr.bf16.vlgmr.msra.gmra.mrb[16].mxu0 %v553_v49 }
 0x266   :  { %1609 = vmatprep.mubr.bf16.mxu0 %v554_v0  ;;  %1614 = vmatpush3.bf16.msra.mxu0 %v1770_v9  ;;  %v1786_v9 = vld [vmem:[#allocation6] sm:$0xff]  }
 0x267   :  { %1615 = vmatprep.subr.bf16.mxu0 %v1771_v10 }
 0x26a   :  { %1616 = vmatpush3.bf16.msra.mxu0 %v1771_v10  ;;  %v1787_v10 = vld [vmem:[#allocation6 + $0x8] sm:$0xff]  }
 0x26b   :  { %1617 = vmatprep.subr.bf16.mxu0 %v1772_v11 }
 0x26d   :  { %1610 = vmatmul.mubr.bf16.gmra.mrb[20].mxu0 %v555_v63  ;;  %v921_v63 = vsel %vm918_vm3, 1.0, %v1951_v37 }
 0x26e   :  { %1618 = vmatpush3.bf16.msra.mxu0 %v1772_v11  ;;  %v923_v0 = vpack.c.bf16 %v921_v63, %v921_v63  ;;  %v1788_v11 = vld [vmem:[#allocation6 + $0x10] sm:$0xff]  }
 0x26f   :  { %1619 = vmatprep.subr.bf16.mxu0 %v1773_v12 }
 0x272   :  { %1620 = vmatpush3.bf16.msra.mxu0 %v1773_v12  ;;  %v1789_v12 = vld [vmem:[#allocation6 + $0x18] sm:$0xff]  }
 0x273   :  { %1621 = vmatprep.subr.bf16.mxu0 %v1774_v13 }
 0x276   :  { %1622 = vmatpush3.bf16.msra.mxu0 %v1774_v13  ;;  %v1790_v13 = vld [vmem:[#allocation6 + $0x20] sm:$0xff]  }
 0x277   :  { %1623 = vmatprep.subr.bf16.mxu0 %v1775_v14 }
 0x27a   :  { %1624 = vmatpush3.bf16.msra.mxu0 %v1775_v14  ;;  %v1791_v14 = vld [vmem:[#allocation6 + $0x28] sm:$0xff]  }
 0x27b   :  { %1625 = vmatprep.subr.bf16.mxu0 %v1776_v15 }
 0x27e   :  { %1626 = vmatpush3.bf16.msra.mxu0 %v1776_v15 }
 0x27f   :  { %1627 = vmatprep.subr.bf16.mxu0 %v1777_v16 }
 0x282   :  { %1628 = vmatpush3.bf16.msra.mxu0 %v1777_v16 }
 0x283   :  { %1669 = vmatprep.subr.bf16.mxu0 %v1951_v37 }
 0x318   :  { %v1583_v21 = vpop.f32.mrb[8].mxu0 }
 0x319   :  { %v590_v22 = vpop.f32.mrb[9].mxu0 }
 0x31a   :  { %v1584_v23 = vpop.f32.mrb[10].mxu0 }
 0x31b   :  { %v622_v24 = vpack.c.bf16 %v1584_v23, %v1583_v21  ;;  %v593_v25 = vpop.f32.mrb[11].mxu0  ;;  %v1793_v23 = vld [vmem:[#allocation6 + $0x38] sm:$0xff]  }
 0x31c   :  { %v621_v26 = vpack.c.bf16 %v593_v25, %v590_v22  ;;  %v1792_v22 = vld [vmem:[#allocation6 + $0x30] sm:$0xff]  }
 0x31d   :  { %v1795_v25 = vld [vmem:[#allocation9 + $0x8] sm:$0xff]  }
 0x31e   :  { %1629 = vmatprep.mubr.bf16.mxu0 %v621_v26  ;;  %v1796_v26 = vld [vmem:[#allocation9 + $0x10] sm:$0xff]  }
 0x31f   :  { %1630 = vmatmul.mubr.bf16.vlgmr.msra.gmra.mrb[16].mxu0 %v622_v24  ;;  %v1794_v24 = vld [vmem:[#allocation9] sm:$0xff]  }
 0x320   :  { %v1587_v27 = vpop.f32.mrb[12].mxu0  ;;  %1670 = vmatpush3.bf16.msra.mxu0 %v1786_v9 }
 0x321   :  { %v606_v28 = vpop.f32.mrb[13].mxu0  ;;  %1671 = vmatprep.subr.bf16.mxu0 %v1951_v37 }
 0x322   :  { %v1588_v29 = vpop.f32.mrb[14].mxu0 }
 0x323   :  { %v624_v30 = vpack.c.bf16 %v1588_v29, %v1587_v27  ;;  %v609_v31 = vpop.f32.mrb[15].mxu0  ;;  %v1797_v27 = vld [vmem:[#allocation9 + $0x18] sm:$0xff]   ;;  %v1799_v29 = vld [vmem:[#allocation9 + $0x28] sm:$0xff]  }
 0x324   :  { %v623_v32 = vpack.c.bf16 %v609_v31, %v606_v28  ;;  %1672 = vmatpush3.bf16.msra.mxu0 %v1787_v10  ;;  %v1798_v28 = vld [vmem:[#allocation9 + $0x20] sm:$0xff]  }
 0x325   :  { %1673 = vmatprep.subr.bf16.mxu0 %v1951_v37 }
 0x326   :  { %1633 = vmatprep.mubr.bf16.mxu0 %v623_v32 }
 0x327   :  { %1634 = vmatmul.mubr.bf16.gmra.mrb[20].mxu0 %v624_v30  ;;  %v1385_v30 = vld [vmem:[%s2317_s10] ss:$0 sm:$0xff] }
 0x328   :  { %1685 = vmatprep.mubr.msk.bf16.mxu0 %vm1952_vm4, %v1951_v37  ;;  %1674 = vmatpush3.bf16.msra.mxu0 %v1788_v11 }
 0x329   :  { %1675 = vmatprep.subr.bf16.mxu0 %v1951_v37 }
 0x32c   :  { %1676 = vmatpush3.bf16.msra.mxu0 %v1789_v12 }
 0x32d   :  { %1677 = vmatprep.subr.bf16.mxu0 %v1951_v37 }
 0x330   :  { %1678 = vmatpush3.bf16.msra.mxu0 %v1790_v13 }
 0x331   :  { %1679 = vmatprep.subr.bf16.mxu0 %v1951_v37 }
 0x334   :  { %1680 = vmatpush3.bf16.msra.mxu0 %v1791_v14 }
 0x335   :  { %1681 = vmatprep.subr.bf16.mxu0 %v1951_v37 }
 0x338   :  { %1682 = vmatpush3.bf16.msra.mxu0 %v1792_v22 }
 0x339   :  { %1683 = vmatprep.subr.bf16.mxu0 %v1951_v37 }
 0x33c   :  { %1684 = vmatpush3.bf16.msra.mxu0 %v1793_v23 }
 0x3f2   :  { %v1631_v41 = vpop.f32.mrb[16].mxu0 }
 0x3f3   :  { %v852_v43 = vpop.f32.mrb[17].mxu0  ;;  %v892_v45 = vadd.f32 %v1631_v41, %v1382_v42  ;;  %v1800_v41 = vld [vmem:[#allocation9 + $0x30] sm:$0xff]  }
 0x3f4   :  { %v1632_v44 = vpop.f32.mrb[18].mxu0  ;;  %v890_v48 = vadd.f32 %v1382_v42, %v852_v43  ;;  %v1394_v43 = vld [vmem:[#allocation7] ss:$0 sm:$0xff] }
 0x3f5   :  { %v893_v46 = vadd.f32 %v1632_v44, %v1382_v42  ;;  %v855_v47 = vpop.f32.mrb[19].mxu0 }
 0x3f6   :  { %v891_v49 = vadd.f32 %v1382_v42, %v855_v47 }
 0x3f7   :  { %v899_v50 = vpack.c.bf16 %v893_v46, %v892_v45 }
 0x3f8   :  { %v898_v51 = vpack.c.bf16 %v891_v49, %v890_v48 }
 0x3fa   :  { %v1635_v52 = vpop.f32.mrb[20].mxu0  ;;  %1637 = vmatprep.subr.bf16.mxu1 %v898_v51 }
 0x3fb   :  { %v868_v53 = vpop.f32.mrb[21].mxu0  ;;  %1638 = vmatpush3.bf16.msra.mxu1 %v898_v51  ;;  %v896_v55 = vadd.f32 %v1635_v52, %v1382_v42 }
 0x3fc   :  { %v1636_v54 = vpop.f32.mrb[22].mxu0  ;;  %1639 = vmatprep.subr.bf16.mxu1 %v899_v50  ;;  %v894_v59 = vadd.f32 %v1382_v42, %v868_v53  ;;  %v1403_v53 = vld [vmem:[#allocation10] ss:$0 sm:$0xff] }
 0x3fd   :  { %v897_v56 = vadd.f32 %v1636_v54, %v1382_v42  ;;  %v871_v57 = vpop.f32.mrb[23].mxu0 }
 0x3fe   :  { %v895_v60 = vadd.f32 %v1382_v42, %v871_v57  ;;  %v1801_v42 = vld [vmem:[#allocation9 + $0x38] sm:$0xff]  }
 0x3ff   :  { %v901_v61 = vpack.c.bf16 %v897_v56, %v896_v55  ;;  %1640 = vmatpush3.bf16.msra.mxu1 %v899_v50 }
 0x400   :  { %v900_v62 = vpack.c.bf16 %v895_v60, %v894_v59 }
 0x402   :  { %1641 = vmatprep.subr.bf16.mxu1 %v900_v62 }
 0x403   :  { %1642 = vmatpush3.bf16.msra.mxu1 %v900_v62 }
 0x404   :  { %1643 = vmatprep.subr.bf16.mxu1 %v901_v61 }
 0x407   :  { %1644 = vmatpush3.bf16.msra.mxu1 %v901_v61 }
 0x408   :  { %1649 = vmatprep.subr.bf16.mxu1 %v1951_v37 }
 0x40a   :  { %1646 = vmatmul.mubr.msk.bf16.vlgmr.msra.gmra.mrb[8].mxu1 %vm189_vm0, %v923_v0 }
 0x40b   :  { %1650 = vmatpush3.bf16.msra.mxu1 %v1778_v1  ;;  %1665 = vmatprep.mubr.msk.bf16.mxu1 %vm1952_vm4, %v1951_v37 }
 0x40c   :  { %1651 = vmatprep.subr.bf16.mxu1 %v1951_v37 }
 0x40f   :  { %1652 = vmatpush3.bf16.msra.mxu1 %v1779_v2 }
 0x410   :  { %1653 = vmatprep.subr.bf16.mxu1 %v1951_v37 }
 0x413   :  { %1654 = vmatpush3.bf16.msra.mxu1 %v1780_v3 }
 0x414   :  { %1655 = vmatprep.subr.bf16.mxu1 %v1951_v37 }
 0x417   :  { %1656 = vmatpush3.bf16.msra.mxu1 %v1781_v4 }
 0x418   :  { %1657 = vmatprep.subr.bf16.mxu1 %v1951_v37 }
 0x41b   :  { %1658 = vmatpush3.bf16.msra.mxu1 %v1782_v5 }
 0x41c   :  { %1659 = vmatprep.subr.bf16.mxu1 %v1951_v37 }
 0x41f   :  { %1660 = vmatpush3.bf16.msra.mxu1 %v1783_v6 }
 0x420   :  { %1661 = vmatprep.subr.bf16.mxu1 %v1951_v37 }
 0x423   :  { %1662 = vmatpush3.bf16.msra.mxu1 %v1784_v7 }
 0x424   :  { %1663 = vmatprep.subr.bf16.mxu1 %v1951_v37 }
 0x427   :  { %1664 = vmatpush3.bf16.msra.mxu1 %v1785_v8 }
 0x428   :  { %1689 = vmatprep.subr.bf16.mxu1 %v1951_v37 }
 0x4dd   :  { %v1647_v15 = vpop.f32.mrb[8].mxu1 }
 0x4de   :  { %v964_v16 = vpop.f32.mrb[9].mxu1 }
 0x4df   :  { %v979_v17 = vmul.f32 %v1647_v15, %v964_v16  ;;  %v1648_v18 = vpop.f32.mrb[10].mxu1 }
 0x4e0   :  { %v967_v19 = vpop.f32.mrb[11].mxu1 }
 0x4e1   :  { %v978_v20 = vmul.f32 %v967_v19, %v964_v16 }
 0x4e3   :  { %v980_v21 = vpack.c.bf16 %v979_v17, %v978_v20 }
 0x4e5   :  { %1666 = vmatmul.mubr.bf16.vlgmr.msra.gmra.mrb[12].mxu1 %v980_v21 }
 0x4e6   :  { %1705 = vmatprep.mubr.msk.bf16.mxu1 %vm1952_vm4, %v1951_v37  ;;  %1690 = vmatpush3.bf16.msra.mxu1 %v1794_v24 }
 0x4e7   :  { %1691 = vmatprep.subr.bf16.mxu1 %v1951_v37 }
 0x4ea   :  { %1692 = vmatpush3.bf16.msra.mxu1 %v1795_v25 }
 0x4eb   :  { %1693 = vmatprep.subr.bf16.mxu1 %v1951_v37 }
 0x4ee   :  { %1694 = vmatpush3.bf16.msra.mxu1 %v1796_v26 }
 0x4ef   :  { %1695 = vmatprep.subr.bf16.mxu1 %v1951_v37 }
 0x4f2   :  { %1696 = vmatpush3.bf16.msra.mxu1 %v1797_v27 }
 0x4f3   :  { %1697 = vmatprep.subr.bf16.mxu1 %v1951_v37 }
 0x4f6   :  { %1698 = vmatpush3.bf16.msra.mxu1 %v1798_v28 }
 0x4f7   :  { %1699 = vmatprep.subr.bf16.mxu1 %v1951_v37 }
 0x4fa   :  { %1700 = vmatpush3.bf16.msra.mxu1 %v1799_v29 }
 0x4fb   :  { %1701 = vmatprep.subr.bf16.mxu1 %v1951_v37 }
 0x4fe   :  { %1702 = vmatpush3.bf16.msra.mxu1 %v1800_v41 }
 0x4ff   :  { %1703 = vmatprep.subr.bf16.mxu1 %v1951_v37 }
 0x502   :  { %1704 = vmatpush3.bf16.msra.mxu1 %v1801_v42 }
 0x5b8   :  { %v1086_v31 = vpop.f32.mrb[12].mxu1 }
 0x5b9   :  { %v1087_v32 = vadd.f32 %v1385_v30, %v1086_v31  ;;  %v1667_v33 = vpop.f32.mrb[13].mxu1 }
 0x5ba   :  { %v1089_v34 = vpop.f32.mrb[14].mxu1 }
 0x5bb   :  { %v1090_v35 = vadd.f32 %v1385_v30, %v1089_v34  ;;  %v1668_v36 = vpop.f32.mrb[15].mxu1  ;;  %v1093_v38 = vmax.f32 %v1087_v32, 0.0 }
 0x5bd   :  { %v1094_v39 = vmax.f32 %v1090_v35, 0.0 }
 0x5bf   :  { %v1095_v40 = vpack.c.bf16 %v1094_v39, %v1093_v38 }
 0x5c1   :  { %1686 = vmatmul.mubr.bf16.vlgmr.msra.gmra.mrb[24].mxu0 %v1095_v40 }
 0x694   :  { %v1201_v44 = vpop.f32.mrb[24].mxu0 }
 0x695   :  { %v1202_v45 = vadd.f32 %v1394_v43, %v1201_v44  ;;  %v1687_v46 = vpop.f32.mrb[25].mxu0 }
 0x696   :  { %v1204_v47 = vpop.f32.mrb[26].mxu0 }
 0x697   :  { %v1205_v48 = vadd.f32 %v1394_v43, %v1204_v47  ;;  %v1688_v49 = vpop.f32.mrb[27].mxu0  ;;  %v1208_v50 = vmax.f32 %v1202_v45, 0.0 }
 0x699   :  { %v1209_v51 = vmax.f32 %v1205_v48, 0.0 }
 0x69b   :  { %v1210_v52 = vpack.c.bf16 %v1209_v51, %v1208_v50 }
 0x69d   :  { %1706 = vmatmul.mubr.bf16.vlgmr.msra.gmra.mrb[16].mxu1 %v1210_v52 }
 0x770   :  { %v1316_v54 = vpop.f32.mrb[16].mxu1 }
 0x771   :  { %v1317_v55 = vadd.f32 %v1403_v53, %v1316_v54  ;;  %v1707_v56 = vpop.f32.mrb[17].mxu1 }
 0x772   :  { %v1319_v57 = vpop.f32.mrb[18].mxu1 }
 0x773   :  { %1323 = vst [vmem:[%s2322_s15] sm:$0xff] %v1317_v55  ;;  %v1320_v37 = vadd.f32 %v1403_v53, %v1319_v57  ;;  %v1708_v58 = vpop.f32.mrb[19].mxu1 }
 0x775   :  { %1324 = vst [vmem:[%s2322_s15 + $0x8] sm:$0xff] %v1320_v37 }
 0x776   :  { %1329 = vsyncpa [#allocation3], 1 }
 0x777   :  { %1330 = vsyncpa [#allocation5], 1 }
 0x778   :  { %1331 = vsyncpa [#allocation8], 1 }
 0x779   :  { %1332 = vsyncpa [#allocation11], 1 }

</bundles_post_ra>
